<compile_context>
chip_gen: v7x
topology: tpu7x:2x2x1
jax: 0.10.0
libtpu: 0.0.40
codegen_flags: <defaults>
</compile_context>

<pallas_src>
import functools

import jax
import jax.numpy as jnp
from jax.experimental import pallas as pl
from jax.experimental.pallas import tpu as pltpu


def _attention_kernel_fma(x_ref, w_ref, shift_ref, o_ref, *, nb, c_in):
    # x_ref:     (NB, C_in, TL)    NCL layout, one batch-block / L-tile
    # w_ref:     (C_in, C_out, 1)  BN-scaled conv weight, per input channel
    # shift_ref: (C_out, 1)        folded conv-bias / BN shift
    # o_ref:     (NB, C_out, TL)
    shift = shift_ref[...]
    w_cols = [w_ref[c] for c in range(c_in)]          # each (C_out, 1)
    for b in range(nb):                                # static unroll, NB small
        xb = x_ref[b]                                  # (C_in, TL)
        acc = w_cols[0] * xb[0:1, :]                   # (C_out, TL) broadcast FMA
        for c in range(1, c_in):
            acc = acc + w_cols[c] * xb[c:c + 1, :]
        o_ref[b] = jax.nn.sigmoid(acc + shift)         # full lane-dense store


def _attention_kernel_mxu(x_ref, w_ref, shift_ref, o_ref, *, nb):
    # Fallback for large channel counts: real MXU matmul per batch row.
    # x_ref: (NB, C_in, TL)  w_ref: (C_out, C_in)  shift: (C_out, 1)
    shift = shift_ref[...]
    w = w_ref[...]
    for b in range(nb):
        y = jnp.dot(w, x_ref[b], preferred_element_type=jnp.float32)
        o_ref[b] = jax.nn.sigmoid(y + shift)


def _round_up(a, b):
    return ((a + b - 1) // b) * b


def _pad8(c):
    return _round_up(max(int(c), 1), 8)


def _choose_tiles(n, c_in, c_out, l, blk_cap_bytes):
    """Pick (NB, TL, Lp): big per-step blocks, no extra L pad, >=2 grid steps."""
    lp = _round_up(l, 128)
    m = lp // 128
    chan_bytes = 4 * (_pad8(c_in) + _pad8(c_out))      # VMEM bytes per L column

    # Largest TL (multiple of 128) that exactly divides Lp and fits the cap.
    tl_cap = 8192
    tl = 128
    for d in sorted((d for d in range(1, m + 1) if m % d == 0), reverse=True):
        t = d * 128
        if t <= tl_cap and t * chan_bytes <= blk_cap_bytes:
            tl = t
            break
    n_ltiles = lp // tl

    def blk_bytes(nb):                                  # x + out block, f32
        return nb * tl * chan_bytes

    def steps(nb):
        return (n // nb) * n_ltiles

    nb_unroll_cap = 32
    total_max = n * n_ltiles
    divisors = [d for d in range(n, 0, -1) if n % d == 0]
    cands = [nb for nb in divisors
             if nb <= nb_unroll_cap
             and blk_bytes(nb) <= blk_cap_bytes
             and steps(nb) >= min(2, total_max)]
    if not cands:
        return 1, tl, lp
    best = max(cands)                                   # biggest valid block
    # Prefer >=4 grid steps (v7x dual-TC balance) unless it starves the block.
    pref = [nb for nb in cands if steps(nb) >= min(4, total_max)]
    if pref:
        p = max(pref)
        if blk_bytes(p) >= (1 << 20) or blk_bytes(best) < (1 << 20):
            best = p
    return best, tl, lp


def attention_forward(x_ncl, weight, bias, gamma, beta, running_mean,
                      running_var, eps=1e-5):
    """Conv1d(k=1) + BatchNorm1d (inference) + Sigmoid.

    x_ncl: (N, C_in, L) float32 -> (N, C_out, L) float32, NCL layout kept.
    """
    N, C_in, L = x_ncl.shape
    C_out = weight.shape[0]

    # ---- Fold conv bias + inference BN into a single (weight, shift). ----
    scale = gamma / jnp.sqrt(running_var + eps)                 # (C_out,)
    w2d = weight[:, :, 0] * scale[:, None]                      # (C_out, C_in)
    shift = (bias * scale + beta - running_mean * scale).reshape(C_out, 1)

    # ---- Per-generation VMEM sizing (v7x: 64 MiB, v5e/v6e: 128 MiB). ----
    try:
        vmem_phys = int(pltpu.get_tpu_info().vmem_capacity_bytes)
    except Exception:
        vmem_phys = 64 * 1024 * 1024                            # v7x-safe fallback
    vmem_limit = min((vmem_phys * 3) // 4, 100 * 1024 * 1024)
    blk_cap = vmem_limit // 4            # x+out block; x2 for double buffering

    NB, TL, Lp = _choose_tiles(N, C_in, C_out, L, blk_cap)
    if Lp != L:
        x_ncl = jnp.pad(x_ncl, ((0, 0), (0, 0), (0, Lp - L)))

    grid = (N // NB, Lp // TL)

    # Tiny channel counts -> unrolled VPU broadcast-FMA; large -> MXU dot.
    use_fma = (C_in <= 32) and (C_out <= 256)
    if use_fma:
        kernel = functools.partial(_attention_kernel_fma, nb=NB, c_in=C_in)
        w_arg = jnp.transpose(w2d).reshape(C_in, C_out, 1)
        w_spec = pl.BlockSpec((C_in, C_out, 1), lambda n, l: (0, 0, 0))
    else:
        kernel = functools.partial(_attention_kernel_mxu, nb=NB)
        w_arg = w2d
        w_spec = pl.BlockSpec((C_out, C_in), lambda n, l: (0, 0))

    out = pl.pallas_call(
        kernel,
        out_shape=jax.ShapeDtypeStruct((N, C_out, Lp), jnp.float32),
        grid=grid,
        in_specs=[
            pl.BlockSpec((NB, C_in, TL), lambda n, l: (n, 0, l)),
            w_spec,
            pl.BlockSpec((C_out, 1), lambda n, l: (0, 0)),
        ],
        out_specs=pl.BlockSpec((NB, C_out, TL), lambda n, l: (n, 0, l)),
        compiler_params=pltpu.CompilerParams(
            dimension_semantics=("parallel", "parallel"),
            vmem_limit_bytes=vmem_limit),
        cost_estimate=pl.CostEstimate(
            flops=2 * N * Lp * C_in * C_out,
            transcendentals=N * Lp * C_out,
            bytes_accessed=4 * (N * Lp * (C_in + C_out)
                                + C_out * C_in + C_out)),
    )(x_ncl, w_arg, shift)

    return out[:, :, :L]


if __name__ == "__main__":
    key = jax.random.PRNGKey(0)
    k_x, k_w, k_b, k_g, k_be, k_rm, k_rv = jax.random.split(key, 7)

    N, C_in, C_out, L = 2, 4, 8, 16

    x = jax.random.normal(k_x, (N, C_in, L), dtype=jnp.float32)

    # deterministic parameter init (Conv1d weight (C_out, C_in, 1), bias (C_out,))
    weight = jax.random.normal(k_w, (C_out, C_in, 1), dtype=jnp.float32) * 0.5
    bias = jax.random.normal(k_b, (C_out,), dtype=jnp.float32) * 0.1
    # BatchNorm1d params / running stats (inference mode)
    gamma = 1.0 + 0.1 * jax.random.normal(k_g, (C_out,), dtype=jnp.float32)
    beta = 0.1 * jax.random.normal(k_be, (C_out,), dtype=jnp.float32)
    running_mean = 0.1 * jax.random.normal(k_rm, (C_out,), dtype=jnp.float32)
    running_var = jnp.abs(
        1.0 + 0.1 * jax.random.normal(k_rv, (C_out,), dtype=jnp.float32))

    out = attention_forward(x, weight, bias, gamma, beta,
                            running_mean, running_var)
    out = jax.block_until_ready(out)

    # pure-JAX reference check (conv1d k=1 == einsum over channels)
    eps = 1e-5
    y_ref = jnp.einsum('oc,ncl->nol', weight[:, :, 0], x) + bias[None, :, None]
    y_ref = (y_ref - running_mean[None, :, None]) / jnp.sqrt(
        running_var[None, :, None] + eps)
    y_ref = y_ref * gamma[None, :, None] + beta[None, :, None]
    y_ref = jax.nn.sigmoid(y_ref)
    assert out.shape == (N, C_out, L)
    assert jnp.max(jnp.abs(out - y_ref)) < 1e-5

    print("KERNEL_OK")
</pallas_src>

<mosaic_0001>
module attributes {stable_mosaic.version = 11 : i64} {
  func.func @_attention_kernel_fma(%arg0: i32, %arg1: i32, %arg2: memref<1x4x128xf32, #tpu.memory_space<vmem>>, %arg3: memref<4x8x1xf32, #tpu.memory_space<vmem>>, %arg4: memref<8x1xf32, #tpu.memory_space<vmem>>, %arg5: memref<1x8x128xf32, #tpu.memory_space<vmem>>) attributes {dimension_semantics = [#tpu.dimension_semantics<parallel>, #tpu.dimension_semantics<parallel>], iteration_bounds = array<i64: 2, 1>, scalar_prefetch = 0 : i64, scratch_operands = 0 : i64, tpu.core_type = #tpu.core_type<tc>, window_params = [{transform_indices = @transform_0, window_bounds = array<i64: 1, 4, 128>}, {pipeline_mode = #tpu.pipeline_mode<synchronous>, transform_indices = @transform_1, window_bounds = array<i64: 4, 8, 1>}, {pipeline_mode = #tpu.pipeline_mode<synchronous>, transform_indices = @transform_2, window_bounds = array<i64: 8, 1>}, {transform_indices = @transform_3, window_bounds = array<i64: 1, 8, 128>}]} {
    %c0 = arith.constant 0 : index
    %c0_0 = arith.constant 0 : index
    %0 = vector.load %arg4[%c0, %c0_0] : memref<8x1xf32, #tpu.memory_space<vmem>>, vector<8x1xf32>
    %c0_1 = arith.constant 0 : index
    %c0_2 = arith.constant 0 : index
    %c0_3 = arith.constant 0 : index
    %1 = vector.load %arg3[%c0_1, %c0_2, %c0_3] : memref<4x8x1xf32, #tpu.memory_space<vmem>>, vector<1x8x1xf32>
    %2 = vector.shape_cast %1 : vector<1x8x1xf32> to vector<8x1xf32>
    %c1 = arith.constant 1 : index
    %c0_4 = arith.constant 0 : index
    %c0_5 = arith.constant 0 : index
    %3 = vector.load %arg3[%c1, %c0_4, %c0_5] : memref<4x8x1xf32, #tpu.memory_space<vmem>>, vector<1x8x1xf32>
    %4 = vector.shape_cast %3 : vector<1x8x1xf32> to vector<8x1xf32>
    %c2 = arith.constant 2 : index
    %c0_6 = arith.constant 0 : index
    %c0_7 = arith.constant 0 : index
    %5 = vector.load %arg3[%c2, %c0_6, %c0_7] : memref<4x8x1xf32, #tpu.memory_space<vmem>>, vector<1x8x1xf32>
    %6 = vector.shape_cast %5 : vector<1x8x1xf32> to vector<8x1xf32>
    %c3 = arith.constant 3 : index
    %c0_8 = arith.constant 0 : index
    %c0_9 = arith.constant 0 : index
    %7 = vector.load %arg3[%c3, %c0_8, %c0_9] : memref<4x8x1xf32, #tpu.memory_space<vmem>>, vector<1x8x1xf32>
    %8 = vector.shape_cast %7 : vector<1x8x1xf32> to vector<8x1xf32>
    %c0_10 = arith.constant 0 : index
    %c0_11 = arith.constant 0 : index
    %c0_12 = arith.constant 0 : index
    %9 = vector.load %arg2[%c0_10, %c0_11, %c0_12] : memref<1x4x128xf32, #tpu.memory_space<vmem>>, vector<1x4x128xf32>
    %10 = vector.shape_cast %9 : vector<1x4x128xf32> to vector<4x128xf32>
    %11 = vector.extract_strided_slice %10 {offsets = [0, 0], sizes = [1, 128], strides = [1, 1]} : vector<4x128xf32> to vector<1x128xf32>
    %12 = vector.broadcast %2 : vector<8x1xf32> to vector<8x128xf32>
    %13 = vector.broadcast %11 : vector<1x128xf32> to vector<8x128xf32>
    %14 = arith.mulf %12, %13 : vector<8x128xf32>
    %15 = vector.extract_strided_slice %10 {offsets = [1, 0], sizes = [1, 128], strides = [1, 1]} : vector<4x128xf32> to vector<1x128xf32>
    %16 = vector.broadcast %4 : vector<8x1xf32> to vector<8x128xf32>
    %17 = vector.broadcast %15 : vector<1x128xf32> to vector<8x128xf32>
    %18 = arith.mulf %16, %17 : vector<8x128xf32>
    %19 = arith.addf %14, %18 : vector<8x128xf32>
    %20 = vector.extract_strided_slice %10 {offsets = [2, 0], sizes = [1, 128], strides = [1, 1]} : vector<4x128xf32> to vector<1x128xf32>
    %21 = vector.broadcast %6 : vector<8x1xf32> to vector<8x128xf32>
    %22 = vector.broadcast %20 : vector<1x128xf32> to vector<8x128xf32>
    %23 = arith.mulf %21, %22 : vector<8x128xf32>
    %24 = arith.addf %19, %23 : vector<8x128xf32>
    %25 = vector.extract_strided_slice %10 {offsets = [3, 0], sizes = [1, 128], strides = [1, 1]} : vector<4x128xf32> to vector<1x128xf32>
    %26 = vector.broadcast %8 : vector<8x1xf32> to vector<8x128xf32>
    %27 = vector.broadcast %25 : vector<1x128xf32> to vector<8x128xf32>
    %28 = arith.mulf %26, %27 : vector<8x128xf32>
    %29 = arith.addf %24, %28 : vector<8x128xf32>
    %30 = vector.broadcast %0 : vector<8x1xf32> to vector<8x128xf32>
    %31 = arith.addf %29, %30 : vector<8x128xf32>
    %32 = arith.negf %31 : vector<8x128xf32>
    %33 = math.exp %32 : vector<8x128xf32>
    %cst = arith.constant 1.000000e+00 : f32
    %34 = vector.broadcast %cst : f32 to vector<8x128xf32>
    %35 = arith.addf %34, %33 : vector<8x128xf32>
    %36 = arith.divf %34, %35 : vector<8x128xf32>
    %c0_13 = arith.constant 0 : index
    %c0_14 = arith.constant 0 : index
    %c0_15 = arith.constant 0 : index
    %37 = vector.load %arg5[%c0_13, %c0_14, %c0_15] : memref<1x8x128xf32, #tpu.memory_space<vmem>>, vector<1x8x128xf32>
    %38 = vector.shape_cast %37 : vector<1x8x128xf32> to vector<8x128xf32>
    %39 = vector.shape_cast %36 : vector<8x128xf32> to vector<1x8x128xf32>
    tpu.vector_store %arg5[%c0_13, %c0_14, %c0_15], %39 {strides = array<i32>} : memref<1x8x128xf32, #tpu.memory_space<vmem>>, vector<1x8x128xf32>,
    return
  }
  func.func @transform_0(%arg0: i32, %arg1: i32) -> (i32, i32, i32) {
    %c0_i32 = arith.constant 0 : i32
    %c0_i32_0 = arith.constant 0 : i32
    return %arg0, %c0_i32, %arg1 : i32, i32, i32
  }
  func.func @transform_1(%arg0: i32, %arg1: i32) -> (i32, i32, i32) {
    %c0_i32 = arith.constant 0 : i32
    %c0_i32_0 = arith.constant 0 : i32
    %c0_i32_1 = arith.constant 0 : i32
    %c0_i32_2 = arith.constant 0 : i32
    return %c0_i32, %c0_i32_0, %c0_i32_1 : i32, i32, i32
  }
  func.func @transform_2(%arg0: i32, %arg1: i32) -> (i32, i32) {
    %c0_i32 = arith.constant 0 : i32
    %c0_i32_0 = arith.constant 0 : i32
    %c0_i32_1 = arith.constant 0 : i32
    return %c0_i32, %c0_i32_0 : i32, i32
  }
  func.func @transform_3(%arg0: i32, %arg1: i32) -> (i32, i32, i32) {
    %c0_i32 = arith.constant 0 : i32
    %c0_i32_0 = arith.constant 0 : i32
    return %arg0, %c0_i32, %arg1 : i32, i32, i32
  }
}

</mosaic_0001>

<bundles_post_ra>
// kernel: tpu_custom_call.1
= control target key start
LH: loop header
LB: loop body
LE: loop exit
PB: predicated region body
PF: predicated region fallthrough
CT: control target
= control target key end

     0   :  { %8 = vsyncpa [#allocation3], 0  ;;  %s648_s0 = inlined_call_operand.vmem [shape: f32[2,4,128], index: 0, kind: input, shape index: {}]   ;;  %s649_s1 = inlined_call_operand.vmem [shape: f32[4,8,1], index: 1, kind: input, shape index: {}]   ;;  %s650_s2 = inlined_call_operand.vmem [shape: f32[8,1], index: 2, kind: input, shape index: {}]   ;;  %s651_s3 = inlined_call_operand.hbm [shape: f32[2,8,128], index: 3, kind: output, shape index: {}]  }
   0x1   :  { %10 = vsyncpa [#allocation3 + $0x1], 0  ;;  %s521_s12 = smov 0   ;;  %s523_s13 = smov 0  }
   0x2   :  { %s525_s14 = smov 0   ;;  %s527_s15 = smov 0  }
   0x3   :  { %s529_s16 = smov 0   ;;  %s531_s17 = smov 0  }
   0x4 LB: > { %s342_s18 = sadd.s32 4294967295, %s497_s17   ;;  %s343_s19 = sadd.s32 4294967294, %s497_s17   ;;  %s497_s17 = sphi %s531_s17, %s16_s17   ;;  %s493_s16 = sphi %s529_s16, %s658_s16   ;;  %s489_s15 = sphi %s527_s15, %s657_s15   ;;  %s485_s14 = sphi %s525_s14, %s656_s14   ;;  %s481_s13 = sphi %s523_s13, %s655_s13   ;;  %s477_s12 = sphi %s521_s12, %s654_s12  }
   0x5   : > { %s28_s20 = sadd.s32 1, %s493_s16  ;;  %s107_s21 = sadd.s32 1, %s485_s14 }
   0x6   : > { %p30_p0 = scmp.ge.s32.totalorder %s28_s20, 2  ;;  %p117_p1 = scmp.ne.s32.totalorder %s485_s14, %s481_s13 }
   0x7   : > { %p118_p2 = scmp.eq.s32.totalorder %s342_s18, 1  ;;  %p123_p3 = scmp.ne.s32.totalorder %s481_s13, %s477_s12 }
   0x8   : > { %s660_s20 = smov (%p30_p0, %s28_s20), 0  ;;  %p124_p5 = scmp.eq.s32.totalorder %s343_s19, 1 }
   0x9   : > { %p561_p4 = por %p118_p2, %p117_p1  ;;  %s102_s23 = ssub.s32 %s493_s16, %s660_s20 }
   0xa   : > { %p346_p6 = scmp.ge.s32.totalorder %s497_s17, 1  ;;  %p105_p7 = scmp.eq.s32.totalorder %s102_s23, 0 }
   0xb   : > { %p568_p8 = por %p124_p5, %p123_p3  ;;  %p158_p9 = scmp.lt.s32.totalorder %s497_s17, 3 }
   0xc   : > { %s574_s25 = scalar_select %p105_p7, %s485_s14, %s107_s21  }
   0xd   : > { %p159_p10 = pnand %p346_p6, %p158_p9 }
   0xe   : > { %v350_v0 = vld [vmem:[%s649_s1 + $0x10] sm:$0xff] (!%p159_p10)  ;;  %v192_v1 = vld [vmem:[%s649_s1] sm:$0xff] (!%p159_p10)  ;;  %v499_v2 = vmov (!%p159_p10), 0   ;;  %v351_v3 = vld [vmem:[%s649_s1 + $0x18] sm:$0xff] (!%p159_p10)  ;;  %p184_p11 = scmp.lt.s32.totalorder (!%p159_p10), %s489_s15, 1  ;;  %v205_v6 = vlaneseq (!%p159_p10)  ;;  %s181_s21 = sand.u32 (!%p159_p10), 1, %s481_s13  }
   0xf   : > { %162 = sbr.rel (%p159_p10) target bundleno = 198 (0xc6), region = 32  ;;  %414 = vset.pattern.permute.xlu1 (!%p159_p10), %v499_v2  ;;  %413 = vset.pattern.permute.xlu0 (!%p159_p10), %v499_v2  ;;  %v349_v4 = vld [vmem:[%s649_s1 + $0x8] sm:$0xff] (!%p159_p10)  ;;  %v191_v5 = vld [vmem:[%s650_s2] sm:$0xff] (!%p159_p10)  ;;  %s347_s23 = sshll.u32 (!%p159_p10), %s181_s21, 3 }
  0x10   : > { %223 = vperm.xlu1 (!%p159_p10), %414, %v350_v0   ;;  %202 = vperm.xlu0 (!%p159_p10), %413, %v192_v1   ;;  %v206_v7 = vshrl.u32 (!%p159_p10), %v205_v6, 7  ;;  %s354_s26 = sshll.u32 (!%p159_p10), %s489_s15, 7  ;;  %s183_s27 = scalar_lea.vmem (!%p159_p10), [#allocation2], %s347_s23 }
  0x11   : > { %s271_s28 = sshll.u32 (!%p159_p10), %s183_s27, 4  ;;  %s601_s4 = scalar_lea.hbm (!%p159_p10), %s651_s3, %s354_s26  ;;  %s603_s28 = int_to_ptr.vmem [resolvable:$true] %s271_s28 }
  0x12   : > { %v207_v8 = vsub.s32 (!%p159_p10), 0, %v206_v7  ;;  %v217_v9 = vsub.s32 (!%p159_p10), 1, %v206_v7  ;;  %v228_v11 = vsub.s32 (!%p159_p10), 2, %v206_v7  ;;  %v239_v15 = vsub.s32 (!%p159_p10), 3, %v206_v7  ;;  %s257_s5 = scalar_lea.sflag (!%p159_p10), [#allocation3], %s181_s21  ;;  %s419_s6 = scalar_lea.vmem (!%p159_p10), %s603_s28, 128 }
  0x13   : > { %p420_p12 = scmp.ne.s32.totalorder (!%p159_p10), %s603_s28, %s419_s6 }
  0x14   : > { %234 = vperm.xlu1 (!%p159_p10), %414, %v351_v3   ;;  %212 = vperm.xlu0 (!%p159_p10), %413, %v349_v4  }
  0x15   : > { %p421_p13 = pnand (!%p159_p10), %p420_p12, %p561_p4 }
  0x16   : > { %s185_s9 = scalar_select %p184_p11, %s489_s15, 1 }
  0x17   : > { %p422_p0 = pneg %p421_p13  ;;  %s500_s15 = smov [#allocation2]  }
  0x18   : > { %245 = vperm.xlu0 %413, %v191_v5   ;;  %s348_s10 = sshll.u32 %s185_s9, 2  ;;  %s423_s7 = sshll.u32 %s500_s15, 4  ;;  %s424_s7 = int_to_ptr.vmem [resolvable:$false] %s423_s7 }
  0x19   : > { %s190_s19 = scalar_lea.vmem %s648_s0, %s348_s10  ;;  %s425_s8 = scalar_lea.vmem %s424_s7, 256 }
  0x1a   : > { %v199_v10 = vld [vmem:[%s190_s19] sm:$0xf]  ;;  %p426_p1 = scmp.lt.s32.totalorder %s603_s28, %s424_s7  ;;  %p427_p2 = scmp.lt.s32.totalorder %s425_s8, %s419_s6 }
  0x1b   : > { %v208_v14 = vrot.slane %v199_v10, %v207_v8  ;;  %v218_v16 = vrot.slane %v199_v10, %v217_v9  ;;  %v229_v17 = vrot.slane %v199_v10, %v228_v11  ;;  %v240_v20 = vrot.slane %v199_v10, %v239_v15 }
  0x1c   : > { %p428_p3 = por %p427_p2, %p426_p1 }
  0x1e   : > { %p429_p5 = pnand %p428_p3, %p422_p0 }
  0x8f   : > { %v224_v12 = vpop.permute.xlu1 %223  ;;  %v203_v13 = vpop.permute.xlu0 %202 }
  0x90   : > { %v209_v19 = vmul.f32 %v208_v14, %v203_v13  ;;  %v230_v23 = vmul.f32 %v229_v17, %v224_v12 }
  0x93   : > { %v213_v18 = vpop.permute.xlu0 %212  ;;  %v235_v22 = vpop.permute.xlu1 %234 }
  0x94   : > { %v219_v21 = vmul.f32 %v218_v16, %v213_v18  ;;  %v241_v25 = vmul.f32 %v240_v20, %v235_v22 }
  0x96   : > { %v220_v24 = vadd.f32 %v219_v21, %v209_v19 }
  0x97   : > { %v246_v28 = vpop.permute.xlu0 %245 }
  0x98   : > { %v231_v26 = vadd.f32 %v230_v23, %v220_v24 }
  0x9a   : > { %v242_v27 = vadd.f32 %v241_v25, %v231_v26 }
  0x9c   : > { %v248_v29 = vadd.f32 %v246_v28, %v242_v27 }
  0x9e   : > { %v352_v30 = vmul.f32 -1.442695, %v248_v29 }
  0xa0   : > { %415 = vpow2.f32 %v352_v30 }
  0xaa   : > { %v416_v31 = vpop.eup %415 }
  0xab   : > { %v252_v32 = vadd.f32 1.0, %v416_v31 }
  0xad   : > { %417 = vrcp.f32 %v252_v32 }
  0xb7   : > { %v418_v33 = vpop.eup %417 }
  0xb8   : > { %255 = vst [vmem:[%s183_s27] sm:$0xff] %v418_v33 }
  0xb9   : > { %432 = shalt.err (!%p429_p5)
}
  0xba   : > { %s433_s9 = scalar_lea.hbm %s601_s4, 128  ;;  %s437_s18 = scalar_lea.hbm %s651_s3, 256 }
  0xbb   : > { %p434_p6 = scmp.ne.s32.totalorder %s601_s4, %s433_s9  ;;  %p438_p10 = scmp.lt.u32.totalorder %s601_s4, %s651_s3 }
  0xbc   : > { %p439_p11 = scmp.lt.u32.totalorder %s437_s18, %s433_s9  ;;  %p441_p13 = scmp.lt.u32.totalorder %s433_s9, %s601_s4 }
  0xbd   : > { %p435_p7 = pnand %p434_p6, %p561_p4 }
  0xbe   : > { %p440_p12 = por %p439_p11, %p438_p10 }
  0xbf   : > { %p436_p9 = pneg %p435_p7 }
  0xc0   : > { %p442_p0 = por %p441_p13, %p440_p12 }
  0xc2   : > { %p443_p1 = pnand %p442_p0, %p436_p9 }
  0xc4   : > { %446 = shalt.err (!%p443_p1)
}
  0xc5   : > { %357 = dma.vmem_to_hbm [thread:$0]  (%p561_p4), %s603_s28, 128, %s601_s4, %s257_s5  }
  0xc6 PF: > { %p363_p2 = scmp.ge.s32.totalorder %s497_s17, 2  ;;  %s283_s23 = sand.u32 1, %s477_s12  }
  0xc7   : > { %s284_s26 = scalar_lea.sflag [#allocation3], %s283_s23 }
  0xc8   : > { %p360_p3 = pnand %p363_p2, %p568_p8 }
  0xca   : > { %472 = dma.done.wait (!%p360_p3), %s284_s26, 128  }
  0xcb   : > { %474 = vsyncadd (!%p360_p3), %s284_s26, 4294967168  ;;  %s16_s17 = sadd.s32 1, %s497_s17   ;;  %s654_s12 = smov %s481_s13 }
  0xcc   : > { %p13_p5 = scmp.ge.s32.totalorder %s16_s17, 4   ;;  %s655_s13 = smov %s485_s14 }
  0xcd   : > { %s656_s14 = smov %s574_s25  ;;  %s657_s15 = smov %s493_s16 }
  0xce   : > { %s658_s16 = smov %s660_s20  ;;  %15 = sbr.rel (!%p13_p5) target bundleno = 4 (0x4), region = 70 }
  0xd5   :  { %289 = vsyncpa [#allocation3], 1 }
  0xd6   :  { %291 = vsyncpa [#allocation3 + $0x1], 1 }

</bundles_post_ra>
